<compile_context>
chip_gen: v6e
topology: v6e:2x2x1
jax: 0.10.0
libtpu: 0.0.40
codegen_flags: <defaults>
</compile_context>

<pallas_src>
import jax
import jax.numpy as jnp
from jax.experimental import pallas as pl
from jax.experimental.pallas import tpu as pltpu


def _projector_kernel(x1_ref, x2_ref, w1t_ref, w2t_ref, z1_ref, z2_ref):
    tb = x1_ref.shape[0]

    # Fuse both views into a single (2*tb, D) bf16 LHS: one MXU stream per
    # layer, each weight pushed once per grid step.
    x = jnp.concatenate([x1_ref[...], x2_ref[...]], axis=0).astype(jnp.bfloat16)

    # Weights arrive pre-transposed (in, out) and pre-cast to bf16.
    h = jnp.dot(x, w1t_ref[...], preferred_element_type=jnp.float32)
    h = jnp.maximum(h, 0.0)  # ReLU in fp32 on the VPU
    z = jnp.dot(h.astype(jnp.bfloat16), w2t_ref[...],
                preferred_element_type=jnp.float32)

    z1_ref[...] = z[:tb].astype(z1_ref.dtype)
    z2_ref[...] = z[tb:].astype(z2_ref.dtype)


def _pick_tile_b(B, D):
    # Biggest tile that (a) divides B, (b) leaves >=2 grid blocks so the
    # 'parallel' batch axis can be split across TensorCores, and (c) keeps the
    # double-buffered fp32 in/out blocks of both branches under ~8 MiB VMEM.
    vmem_budget = 8 * 1024 * 1024
    for cand in (1024, 512, 256, 128, 64, 32, 16, 8):
        if B % cand != 0 or B // cand < 2:
            continue
        # 2 branches x (input + output) x double-buffer x fp32 block
        if 2 * 2 * 2 * cand * D * 4 <= vmem_budget:
            return cand
    return B  # tiny / odd batch: single block equal to the full array dim


def contrastive_projector(x1, x2, w1, w2, *, tile_b=None):
    """Pallas forward of ContrastiveLearningModule.

    x1, x2 : (B, D) float32
    w1, w2 : (D, D) float32, PyTorch Linear convention (out_features, in_features)
    returns (z1, z2), each (B, D) float32
    """
    B, D = x1.shape
    assert x2.shape == (B, D)
    assert w1.shape == (D, D) and w2.shape == (D, D)

    if tile_b is None:
        tile_b = _pick_tile_b(B, D)
    assert B % tile_b == 0
    grid = (B // tile_b,)

    # One-time tiny wrapper op: (out,in) -> (in,out) and bf16, so the kernel's
    # dots are in canonical MXU layout with no in-kernel transpose/cast.
    w1t = w1.T.astype(jnp.bfloat16)
    w2t = w2.T.astype(jnp.bfloat16)

    x_spec = pl.BlockSpec((tile_b, D), lambda i: (i, 0))
    # Constant index_map -> weight tiles are DMA'd once and kept resident in
    # VMEM across grid steps.
    w_spec = pl.BlockSpec((D, D), lambda i: (0, 0))
    out_spec = pl.BlockSpec((tile_b, D), lambda i: (i, 0))

    cost = pl.CostEstimate(
        flops=2 * 2 * 2 * B * D * D,                       # 2 branches x 2 matmuls
        transcendentals=0,
        bytes_accessed=4 * B * D * 4 + 2 * D * D * 2,      # x1,x2,z1,z2 fp32 + w1t,w2t bf16
    )

    z1, z2 = pl.pallas_call(
        _projector_kernel,
        out_shape=(
            jax.ShapeDtypeStruct((B, D), x1.dtype),
            jax.ShapeDtypeStruct((B, D), x2.dtype),
        ),
        grid_spec=pltpu.PrefetchScalarGridSpec(
            num_scalar_prefetch=0,
            grid=grid,
            in_specs=[x_spec, x_spec, w_spec, w_spec],
            out_specs=[out_spec, out_spec],
        ),
        compiler_params=pltpu.CompilerParams(
            dimension_semantics=("parallel",),
        ),
        cost_estimate=cost,
    )(x1, x2, w1t, w2t)
    return z1, z2


def _reference(x1, x2, w1, w2):
    def proj(x):
        h = jnp.maximum(x @ w1.T, 0.0)
        return h @ w2.T
    return proj(x1), proj(x2)


if __name__ == "__main__":
    B = 256        # batch of feature vectors (allows >=2 grid blocks)
    D = 128        # feature_dim (lane-aligned)

    key = jax.random.PRNGKey(0)
    k_x1, k_x2, k_w1, k_w2 = jax.random.split(key, 4)

    x1 = jax.random.normal(k_x1, (B, D), dtype=jnp.float32)
    x2 = jax.random.normal(k_x2, (B, D), dtype=jnp.float32)

    # Deterministic init mimicking nn.Linear's Kaiming-uniform bound: U(-1/sqrt(D), 1/sqrt(D))
    bound = 1.0 / jnp.sqrt(jnp.float32(D))
    w1 = jax.random.uniform(k_w1, (D, D), dtype=jnp.float32, minval=-bound, maxval=bound)
    w2 = jax.random.uniform(k_w2, (D, D), dtype=jnp.float32, minval=-bound, maxval=bound)

    z1, z2 = contrastive_projector(x1, x2, w1, w2)
    jax.block_until_ready((z1, z2))

    z1_ref, z2_ref = _reference(x1, x2, w1, w2)
    assert z1.shape == (B, D) and z2.shape == (B, D)
    # bf16 MXU operands with fp32 accumulation: compare against the fp32
    # reference with a tolerance sized for bf16 rounding over a D=128 contraction.
    assert jnp.allclose(z1, z1_ref, atol=3e-2, rtol=3e-2)
    assert jnp.allclose(z2, z2_ref, atol=3e-2, rtol=3e-2)

    print("KERNEL_OK")
</pallas_src>

<mosaic_0001>
module attributes {stable_mosaic.version = 11 : i64} {
  func.func @_projector_kernel(%arg0: i32, %arg1: memref<128x128xf32, #tpu.memory_space<vmem>>, %arg2: memref<128x128xf32, #tpu.memory_space<vmem>>, %arg3: memref<128x128xbf16, #tpu.memory_space<vmem>>, %arg4: memref<128x128xbf16, #tpu.memory_space<vmem>>, %arg5: memref<128x128xf32, #tpu.memory_space<vmem>>, %arg6: memref<128x128xf32, #tpu.memory_space<vmem>>) attributes {dimension_semantics = [#tpu.dimension_semantics<parallel>], iteration_bounds = array<i64: 2>, scalar_prefetch = 0 : i64, scratch_operands = 0 : i64, tpu.core_type = #tpu.core_type<tc>, window_params = [{transform_indices = @transform_0, window_bounds = array<i64: 128, 128>}, {transform_indices = @transform_1, window_bounds = array<i64: 128, 128>}, {pipeline_mode = #tpu.pipeline_mode<synchronous>, transform_indices = @transform_2, window_bounds = array<i64: 128, 128>}, {pipeline_mode = #tpu.pipeline_mode<synchronous>, transform_indices = @transform_3, window_bounds = array<i64: 128, 128>}, {transform_indices = @transform_4, window_bounds = array<i64: 128, 128>}, {transform_indices = @transform_5, window_bounds = array<i64: 128, 128>}]} {
    %c0 = arith.constant 0 : index
    %c0_0 = arith.constant 0 : index
    %0 = vector.load %arg1[%c0, %c0_0] : memref<128x128xf32, #tpu.memory_space<vmem>>, vector<128x128xf32>
    %c0_1 = arith.constant 0 : index
    %c0_2 = arith.constant 0 : index
    %1 = vector.load %arg2[%c0_1, %c0_2] : memref<128x128xf32, #tpu.memory_space<vmem>>, vector<128x128xf32>
    %2 = tpu.concatenate %0, %1 in 0 : vector<128x128xf32>, vector<128x128xf32> -> vector<256x128xf32>
    %3 = arith.truncf %2 : vector<256x128xf32> to vector<256x128xbf16>
    %c0_3 = arith.constant 0 : index
    %c0_4 = arith.constant 0 : index
    %4 = vector.load %arg3[%c0_3, %c0_4] : memref<128x128xbf16, #tpu.memory_space<vmem>>, vector<128x128xbf16>
    %cst = arith.constant dense<0.000000e+00> : vector<256x128xf32>
    %5 = tpu.matmul %3, %4, %cst {dimension_numbers = #tpu.dot_dimension_numbers<[1], [0], [0], [1], [0, 0, 1, 1], [], []>} : vector<256x128xbf16>, vector<128x128xbf16>, vector<256x128xf32> -> vector<256x128xf32>
    %cst_5 = arith.constant 0.000000e+00 : f32
    %6 = vector.broadcast %cst_5 : f32 to vector<256x128xf32>
    %7 = arith.maximumf %5, %6 : vector<256x128xf32>
    %8 = arith.truncf %7 : vector<256x128xf32> to vector<256x128xbf16>
    %c0_6 = arith.constant 0 : index
    %c0_7 = arith.constant 0 : index
    %9 = vector.load %arg4[%c0_6, %c0_7] : memref<128x128xbf16, #tpu.memory_space<vmem>>, vector<128x128xbf16>
    %cst_8 = arith.constant dense<0.000000e+00> : vector<256x128xf32>
    %10 = tpu.matmul %8, %9, %cst_8 {dimension_numbers = #tpu.dot_dimension_numbers<[1], [0], [0], [1], [0, 0, 1, 1], [], []>} : vector<256x128xbf16>, vector<128x128xbf16>, vector<256x128xf32> -> vector<256x128xf32>
    %11 = vector.extract_strided_slice %10 {offsets = [0, 0], sizes = [128, 128], strides = [1, 1]} : vector<256x128xf32> to vector<128x128xf32>
    %c0_9 = arith.constant 0 : index
    %c0_10 = arith.constant 0 : index
    %12 = vector.load %arg5[%c0_9, %c0_10] : memref<128x128xf32, #tpu.memory_space<vmem>>, vector<128x128xf32>
    tpu.vector_store %arg5[%c0_9, %c0_10], %11 {strides = array<i32>} : memref<128x128xf32, #tpu.memory_space<vmem>>, vector<128x128xf32>,
    %13 = vector.extract_strided_slice %10 {offsets = [128, 0], sizes = [128, 128], strides = [1, 1]} : vector<256x128xf32> to vector<128x128xf32>
    %c0_11 = arith.constant 0 : index
    %c0_12 = arith.constant 0 : index
    %14 = vector.load %arg6[%c0_11, %c0_12] : memref<128x128xf32, #tpu.memory_space<vmem>>, vector<128x128xf32>
    tpu.vector_store %arg6[%c0_11, %c0_12], %13 {strides = array<i32>} : memref<128x128xf32, #tpu.memory_space<vmem>>, vector<128x128xf32>,
    return
  }
  func.func @transform_0(%arg0: i32) -> (i32, i32) {
    %c0_i32 = arith.constant 0 : i32
    %c0_i32_0 = arith.constant 0 : i32
    return %arg0, %c0_i32 : i32, i32
  }
  func.func @transform_1(%arg0: i32) -> (i32, i32) {
    %c0_i32 = arith.constant 0 : i32
    %c0_i32_0 = arith.constant 0 : i32
    return %arg0, %c0_i32 : i32, i32
  }
  func.func @transform_2(%arg0: i32) -> (i32, i32) {
    %c0_i32 = arith.constant 0 : i32
    %c0_i32_0 = arith.constant 0 : i32
    %c0_i32_1 = arith.constant 0 : i32
    return %c0_i32, %c0_i32_0 : i32, i32
  }
  func.func @transform_3(%arg0: i32) -> (i32, i32) {
    %c0_i32 = arith.constant 0 : i32
    %c0_i32_0 = arith.constant 0 : i32
    %c0_i32_1 = arith.constant 0 : i32
    return %c0_i32, %c0_i32_0 : i32, i32
  }
  func.func @transform_4(%arg0: i32) -> (i32, i32) {
    %c0_i32 = arith.constant 0 : i32
    %c0_i32_0 = arith.constant 0 : i32
    return %arg0, %c0_i32 : i32, i32
  }
  func.func @transform_5(%arg0: i32) -> (i32, i32) {
    %c0_i32 = arith.constant 0 : i32
    %c0_i32_0 = arith.constant 0 : i32
    return %arg0, %c0_i32 : i32, i32
  }
}

</mosaic_0001>

<bundles_post_ra>
// kernel: tpu_custom_call.1
= control target key start
LH: loop header
LB: loop body
LE: loop exit
PB: predicated region body
PF: predicated region fallthrough
CT: control target
= control target key end

     0   :  { %s2000_s0 = inlined_call_operand.hbm [shape: f32[256,128], index: 0, kind: input, shape index: {}]   ;;  %s2001_s1 = inlined_call_operand.hbm [shape: f32[256,128], index: 1, kind: input, shape index: {}]   ;;  %s2002_s2 = inlined_call_operand.hbm [shape: bf16[128,128], index: 2, kind: input, shape index: {}]   ;;  %s2003_s3 = inlined_call_operand.hbm [shape: bf16[128,128], index: 3, kind: input, shape index: {}]   ;;  %s2004_s4 = inlined_call_operand.hbm [shape: f32[256,128], index: 4, kind: output, shape index: {0}]   ;;  %s2005_s5 = inlined_call_operand.hbm [shape: f32[256,128], index: 5, kind: output, shape index: {1}]  }
   0x1   :  { %2009 = sst [smem:[#allocation19_spill]] %s2000_s0 }
   0x2   :  { %2010 = sst [smem:[#allocation20_spill]] %s2002_s2 }
   0x3   :  { %11 = vsyncpa [#allocation3], 0 }
   0x4   :  { %13 = vsyncpa [#allocation3 + $0x1], 0 }
   0x5   :  { %14 = vsyncpa [#allocation6], 0 }
   0x6   :  { %16 = vsyncpa [#allocation6 + $0x1], 0 }
   0x7   :  { %17 = vsyncpa [#allocation9], 0 }
   0x8   :  { %18 = vsyncpa [#allocation4], 0 }
   0x9   :  { %20 = vsyncpa [#allocation4 + $0x1], 0 }
   0xa   :  { %21 = vsyncpa [#allocation12], 0 }
   0xb   :  { %23 = vsyncpa [#allocation12 + $0x1], 0  ;;  %s1635_s18 = smov 0   ;;  %s1637_s19 = smov 0  }
   0xc   :  { %s1639_s20 = smov 0   ;;  %s1641_s21 = smov 0  }
   0xd LB: > { %s1656_s22 = sadd.s32 4294967295, %s1591_s21   ;;  %s1088_s23 = sadd.s32 4294967294, %s1591_s21   ;;  %s1591_s21 = sphi %s1641_s21, %s2031_s21   ;;  %s1587_s20 = sphi %s1639_s20, %s2030_s20   ;;  %s1583_s19 = sphi %s1637_s19, %s2029_s19   ;;  %s1579_s18 = sphi %s1635_s18, %s2028_s18  }
   0xe   : > { %p49_p0 = scmp.ne.s32.totalorder %s1583_s19, %s1579_s18  ;;  %p2006_p1 = scmp.eq.s32.totalorder %s1656_s22, 0 }
   0xf   : > { %p147_p3 = scmp.eq.s32.totalorder %s1088_s23, 1  ;;  %p1089_p5 = scmp.ge.s32.totalorder %s1591_s21, 1 }
  0x10   : > { %p1665_p4 = por %p2006_p1, %p49_p0  ;;  %p180_p7 = scmp.lt.s32.totalorder %s1591_s21, 3 }
  0x11   : > { %p1670_p6 = por %p147_p3, %p49_p0  ;;  %s1593_s27 = smov [#allocation7]  }
  0x12   : > { %s2011_s24 = scalar_select %p1665_p4, 1, 0 }
  0x13   : > { %s2012_s25 = scalar_select %p1670_p6, 1, 0 }
  0x14   : > { %p1675_p8 = pnand %p1089_p5, %p180_p7  ;;  %s192_s28 = sshll.u32 %s1593_s27, 4  ;;  %s193_s28 = int_to_ptr.vmem [resolvable:$true] %s192_s28 }
  0x15   : > { %s1594_s30 = smov [#allocation8]   ;;  %s1388_s7 = scalar_lea.vmem %s193_s28, 1024 }
  0x16   : > { %p1294_p9 = pneg %p1675_p8  ;;  %s205_s6 = sshll.u32 %s1594_s30, 4  ;;  %s206_s6 = int_to_ptr.vmem [resolvable:$true] %s205_s6 }
  0x17   : > { %p1389_p13 = scmp.ne.s32.totalorder %s193_s28, %s1388_s7  ;;  %p1396_p5 = scmp.lt.s32.totalorder %s193_s28, %s193_s28 }
  0x18   : > { %p1684_p11 = pnand %p1294_p9, %p2006_p1  ;;  %p1397_p7 = scmp.lt.s32.totalorder %s1388_s7, %s1388_s7 }
  0x1a   : > { %p1379_p12 = pneg %p1684_p11  ;;  %p1398_p10 = por %p1397_p7, %p1396_p5 }
  0x1c   : > { %p1391_p0 = pnand %p1389_p13, %p1379_p12 }
  0x1e   : > { %p1392_p3 = pneg %p1391_p0 }
  0x20   : > { %p1399_p9 = pnand %p1398_p10, %p1392_p3 }
  0x22   : > { %1402 = shalt.err (!%p1399_p9)
}
  0x23   : > { %s1595_s8 = smov 64   ;;  %s1596_s9 = smov 4  }
  0x24   : > { %s2015_s2 = sld [smem:[#allocation20_spill]]  ;;  %s1414_s12 = scalar_lea.vmem %s206_s6, 1024 }
  0x25   : > { %p1415_p1 = scmp.ne.s32.totalorder %s206_s6, %s1414_s12  ;;  %p1422_p2 = scmp.lt.s32.totalorder %s206_s6, %s206_s6 }
  0x26   : > { %p1423_p6 = scmp.lt.s32.totalorder %s1414_s12, %s1414_s12 }
  0x27   : > { %p1417_p13 = pnand %p1415_p1, %p1379_p12 }
  0x28   : > { %p1424_p5 = por %p1423_p6, %p1422_p2 }
  0x29   : > { %p1418_p0 = pneg %p1417_p13 }
  0x2a   : > { %1297 = dma.hbm_to_vmem [thread:$0]  (!%p1684_p11), %s2015_s2, 1024, %s193_s28, [#allocation6], %s1595_s8, %s1595_s8, %s1596_s9  }
  0x2b   : > { %p1425_p10 = pnand %p1424_p5, %p1418_p0 }
  0x2d   : > { %1428 = shalt.err (!%p1425_p10)
}
  0x2e   : > { %1300 = dma.hbm_to_vmem [thread:$0]  (!%p1684_p11), %s2003_s3, 1024, %s206_s6, [#allocation9], %s1595_s8, %s1595_s8, %s1596_s9  }
  0x2f   : > { %s1707_s15 = sadd.s32 1, %s1591_s21   ;;  %s36_s16 = sadd.s32 1, %s1587_s20 }
  0x30   : > { %s33_s17 = ssub.s32 %s1591_s21, %s1707_s15  ;;  %p43_p1 = scmp.ne.s32.totalorder %s1587_s20, %s1583_s19 }
  0x31   : > { %p34_p2 = scmp.eq.s32.totalorder %s33_s17, 0  ;;  %p44_p6 = scmp.eq.s32.totalorder %s1591_s21, 0 }
  0x32   : > { %p2016_p12 = scmp.eq.s32.totalorder %s1656_s22, 1  ;;  %p1317_p7 = scmp.lt.s32.totalorder %s1591_s21, 2 }
  0x33   : > { %s1723_s27 = scalar_select %p34_p2, %s1587_s20, %s36_s16  }
  0x34   : > { %p1717_p3 = por %p2016_p12, %p43_p1  ;;  %p45_p9 = por %p44_p6, %p43_p1 }
  0x35   : > { %s219_s28 = sand.u32 1, %s1587_s20   ;;  %s1130_s30 = sshll.u32 %s1591_s21, 11 }
  0x36   : > { %s2017_s23 = scalar_select %p1717_p3, 1, 0 }
  0x37   : > { %s1726_s29 = sshll.u32 %s219_s28, 7  ;;  %s2018_s0 = sld [smem:[#allocation19_spill]] }
  0x38   : > { %s223_s9 = scalar_lea.vmem [#allocation2], %s1726_s29  ;;  %p1739_p11 = pnand %p1317_p7, %p45_p9 }
  0x39   : > { %s230_s10 = sshll.u32 %s223_s9, 4  ;;  %s1743_s12 = scalar_lea.sflag [#allocation3], %s219_s28  ;;  %s1737_s10 = int_to_ptr.vmem [resolvable:$true] %s230_s10 }
  0x3a   : > { %p1431_p0 = pneg %p1739_p11 }
  0x3d   : > { %s1734_s8 = scalar_lea.hbm %s2018_s0, %s1130_s30  ;;  %s1434_s17 = scalar_lea.hbm %s2018_s0, 4096 }
  0x3e   : > { %s1429_s13 = scalar_lea.hbm %s1734_s8, 2048  ;;  %p1435_p1 = scmp.lt.s32.totalorder %s1734_s8, %s2018_s0 }
  0x3f   : > { %p1430_p13 = scmp.ne.s32.totalorder %s1734_s8, %s1429_s13  ;;  %p1436_p2 = scmp.lt.s32.totalorder %s1434_s17, %s1429_s13 }
  0x41   : > { %p1432_p5 = pnand %p1431_p0, %p1430_p13  ;;  %p1437_p6 = por %p1436_p2, %p1435_p1 }
  0x43   : > { %p1433_p10 = pneg %p1432_p5 }
  0x45   : > { %p1438_p12 = pnand %p1437_p6, %p1433_p10 }
  0x47   : > { %1441 = shalt.err (!%p1438_p12)
}
  0x48   : > { %s1442_s28 = scalar_lea.vmem %s1737_s10, 2048  ;;  %s1597_s9 = smov [#allocation2]  }
  0x49   : > { %p1443_p7 = scmp.ne.s32.totalorder %s1737_s10, %s1442_s28  ;;  %s1447_s14 = sshll.u32 %s1597_s9, 4  ;;  %s1448_s14 = int_to_ptr.vmem [resolvable:$false] %s1447_s14 }
  0x4a   : > { %s1449_s16 = scalar_lea.vmem %s1448_s14, 4096  ;;  %p1450_p5 = scmp.lt.s32.totalorder %s1737_s10, %s1448_s14 }
  0x4b   : > { %p1445_p9 = pnand %p1443_p7, %p1431_p0  ;;  %p1451_p3 = scmp.lt.s32.totalorder %s1449_s16, %s1442_s28 }
  0x4d   : > { %p1446_p13 = pneg %p1445_p9  ;;  %p1452_p4 = por %p1451_p3, %p1450_p5 }
  0x4f   : > { %p1453_p1 = pnand %p1452_p4, %p1446_p13 }
  0x51   : > { %1456 = shalt.err (!%p1453_p1)
}
  0x52   : > { %s1598_s13 = smov 128   ;;  %s1599_s17 = smov 8  }
  0x53   : > { %1304 = dma.hbm_to_vmem [thread:$0]  (!%p1739_p11), %s1734_s8, 2048, %s1737_s10, %s1743_s12, %s1598_s13, %s1598_s13, %s1599_s17  }
  0x54   : > { %s1778_s28 = scalar_lea.hbm %s2001_s1, %s1130_s30  ;;  %s244_s9 = scalar_lea.vmem [#allocation5], %s1726_s29 }
  0x55   : > { %s251_s14 = sshll.u32 %s244_s9, 4  ;;  %s240_s16 = sand.u32 1, %s1591_s21   ;;  %s1781_s14 = int_to_ptr.vmem [resolvable:$true] %s251_s14 }
  0x56   : > { %s241_s0 = scalar_lea.sflag [#allocation6], %s240_s16  ;;  %s1457_s2 = scalar_lea.hbm %s1778_s28, 2048 }
  0x57   : > { %p1458_p4 = scmp.ne.s32.totalorder %s1778_s28, %s1457_s2  ;;  %s1462_s30 = scalar_lea.hbm %s2001_s1, 4096 }
  0x58   : > { %p1463_p2 = scmp.lt.s32.totalorder %s1778_s28, %s2001_s1  ;;  %p1464_p6 = scmp.lt.s32.totalorder %s1462_s30, %s1457_s2 }
  0x59   : > { %p1460_p3 = pnand %p1458_p4, %p1431_p0 }
  0x5a   : > { %p1465_p12 = por %p1464_p6, %p1463_p2 }
  0x5b   : > { %p1461_p10 = pneg %p1460_p3 }
  0x5d   : > { %p1466_p7 = pnand %p1465_p12, %p1461_p10 }
  0x5f   : > { %1469 = shalt.err (!%p1466_p7)
}
  0x60   : > { %s1470_s29 = scalar_lea.vmem %s1781_s14, 2048  ;;  %s1600_s7 = smov [#allocation5]  }
  0x61   : > { %p1471_p9 = scmp.ne.s32.totalorder %s1781_s14, %s1470_s29  ;;  %s1475_s9 = sshll.u32 %s1600_s7, 4  ;;  %s1476_s9 = int_to_ptr.vmem [resolvable:$false] %s1475_s9 }
  0x62   : > { %s1477_s16 = scalar_lea.vmem %s1476_s9, 4096  ;;  %p1478_p1 = scmp.lt.s32.totalorder %s1781_s14, %s1476_s9 }
  0x63   : > { %p1473_p13 = pnand %p1471_p9, %p1431_p0  ;;  %p1479_p4 = scmp.lt.s32.totalorder %s1477_s16, %s1470_s29 }
  0x65   : > { %p1474_p5 = pneg %p1473_p13  ;;  %p1480_p3 = por %p1479_p4, %p1478_p1 }
  0x67   : > { %p1481_p2 = pnand %p1480_p3, %p1474_p5 }
  0x69   : > { %1484 = shalt.err (!%p1481_p2)
}
  0x6a   : > { %1307 = dma.hbm_to_vmem [thread:$0]  (!%p1739_p11), %s1778_s28, 2048, %s1781_s14, %s241_s0, %s1598_s13, %s1598_s13, %s1599_s17  }
  0x6b   : > { %263 = sbr.rel (%p1675_p8) target bundleno = 637 (0x27d), region = 36  ;;  %s1812_s2 = sand.u32 (!%p1675_p8), 1, %s1583_s19  }
  0x6c   : > { %s1815_s8 = sshll.u32 (!%p1675_p8), %s1812_s2, 7  ;;  %s266_s10 = scalar_lea.sflag (!%p1675_p8), [#allocation3], %s1812_s2 }
  0x6d   : > { %s1819_s11 = scalar_lea.vmem (!%p1675_p8), [#allocation2], %s1815_s8  ;;  %p2020_p0 = scmp.ne.s32.totalorder (!%p1675_p8), %s2011_s24, 0 }
  0x70   : > { %1554 = dma.done.wait (%p2020_p0), %s266_s10, 2048  }
  0x71   : > { %1556 = vsyncadd (%p2020_p0), %s266_s10, 4294965248  ;;  %s274_s0 = sand.u32 1, %s1656_s22   ;;  %s1827_s13 = scalar_lea.vmem [#allocation5], %s1815_s8 }
  0x72   : > { %s275_s26 = scalar_lea.sflag [#allocation6], %s274_s0 }
  0x73   : > { %1558 = dma.done.wait (%p2020_p0), %s275_s26, 2048  }
  0x74   : > { %1560 = vsyncadd (%p2020_p0), %s275_s26, 4294965248  ;;  %p2021_p8 = scmp.eq.s32.totalorder %s1656_s22, 0 }
  0x76   : > { %1562 = dma.done.wait (%p2021_p8), [#allocation6], 1024   ;;  %p2022_p11 = pmov %p2021_p8 }
  0x77   : > { %p2023_p10 = pmov %p2021_p8 }
  0x78   : > { %1564 = vsyncadd (%p2022_p11), [#allocation6], 4294966272 }
  0x79   : > { %1566 = dma.done.wait (%p2023_p10), [#allocation9], 1024   ;;  %p2024_p6 = pmov %p2021_p8 }
  0x7a   : > { %v1361_v0 = vld [vmem:[#allocation7 + $0x38] sm:$0xff]   ;;  %v1362_v1 = vld [vmem:[#allocation7 + $0x30] sm:$0xff]   ;;  %v1363_v2 = vld [vmem:[#allocation7 + $0x28] sm:$0xff]   ;;  %s1874_s24 = scalar_lea.vmem [#allocation10], %s1815_s8  ;;  %s1132_s17 = sshll.u32 %s1656_s22, 11 }
  0x7b   : > { %1568 = vsyncadd (%p2024_p6), [#allocation9], 4294966272  ;;  %1182 = vmatprep.subr.bf16.mxu0 %v1361_v0  ;;  %v1364_v3 = vld [vmem:[#allocation7 + $0x20] sm:$0xff]   ;;  %v329_v5 = vld [vmem:[%s1819_s11 + $0x8] sm:$0xff]  ;;  %s925_s28 = sshll.u32 %s1874_s24, 4  ;;  %s1897_s12 = scalar_lea.hbm %s2004_s4, %s1132_s17  ;;  %s1899_s28 = int_to_ptr.vmem [resolvable:$true] %s925_s28 }
  0x7c   : > { %1183 = vmatpush3.bf16.msra.mxu0 %v1361_v0  ;;  %v328_v4 = vld [vmem:[%s1819_s11] sm:$0xff]  ;;  %v1365_v7 = vld [vmem:[#allocation7 + $0x18] sm:$0xff]   ;;  %v1366_v8 = vld [vmem:[#allocation7 + $0x10] sm:$0xff]   ;;  %s907_s6 = scalar_lea.sflag [#allocation4], %s1812_s2  ;;  %s1485_s29 = scalar_lea.vmem %s1899_s28, 2048 }
  0x7d   : > { %1184 = vmatprep.subr.bf16.mxu0 %v1362_v1  ;;  %v360_v6 = vpack.c.bf16 %v329_v5, %v328_v4  ;;  %v1367_v9 = vld [vmem:[#allocation7 + $0x8] sm:$0xff]   ;;  %v1369_v10 = vld [vmem:[#allocation8 + $0x38] sm:$0xff]   ;;  %v1370_v11 = vld [vmem:[#allocation8 + $0x30] sm:$0xff]   ;;  %p1486_p12 = scmp.ne.s32.totalorder %s1899_s28, %s1485_s29  ;;  %p2025_p7 = scmp.ne.s32.totalorder %s2017_s23, 0 }
  0x7e   : > { %1230 = vmatprep.subr.bf16.mxu1 %v1369_v10  ;;  %v1368_v12 = vld [vmem:[#allocation7] sm:$0xff]   ;;  %v1371_v13 = vld [vmem:[#allocation8 + $0x28] sm:$0xff]   ;;  %v330_v14 = vld [vmem:[%s1819_s11 + $0x10] sm:$0xff]  ;;  %s1601_s7 = smov [#allocation10]  }
  0x7f   : > { %1198 = vmatprep.mubr.bf16.mxu0 %v360_v6  ;;  %1231 = vmatpush3.bf16.msra.mxu1 %v1369_v10  ;;  %v331_v15 = vld [vmem:[%s1819_s11 + $0x18] sm:$0xff]  ;;  %v1372_v16 = vld [vmem:[#allocation8 + $0x20] sm:$0xff]   ;;  %v333_v18 = vld [vmem:[%s1819_s11 + $0x28] sm:$0xff]  ;;  %p1487_p9 = pnand %p1486_p12, %p2025_p7  ;;  %s1489_s9 = sshll.u32 %s1601_s7, 4  ;;  %s1490_s9 = int_to_ptr.vmem [resolvable:$false] %s1489_s9 }
  0x80   : > { %1185 = vmatpush3.bf16.msra.mxu0 %v1362_v1  ;;  %1232 = vmatprep.subr.bf16.mxu1 %v1370_v11  ;;  %v332_v17 = vld [vmem:[%s1819_s11 + $0x20] sm:$0xff]  ;;  %v361_v19 = vpack.c.bf16 %v331_v15, %v330_v14  ;;  %v1373_v21 = vld [vmem:[#allocation8 + $0x18] sm:$0xff]   ;;  %v334_v22 = vld [vmem:[%s1819_s11 + $0x30] sm:$0xff]  ;;  %s1491_s16 = scalar_lea.vmem %s1490_s9, 4096  ;;  %p1492_p5 = scmp.lt.s32.totalorder %s1899_s28, %s1490_s9 }
  0x81   : > { %1186 = vmatprep.subr.bf16.mxu0 %v1363_v2  ;;  %v362_v20 = vpack.c.bf16 %v333_v18, %v332_v17  ;;  %v335_v23 = vld [vmem:[%s1819_s11 + $0x38] sm:$0xff]  ;;  %v336_v24 = vld [vmem:[%s1819_s11 + $0x40] sm:$0xff]  ;;  %v337_v25 = vld [vmem:[%s1819_s11 + $0x48] sm:$0xff]  ;;  %p1488_p13 = pneg %p1487_p9  ;;  %p1493_p1 = scmp.lt.s32.totalorder %s1491_s16, %s1485_s29 }
  0x82   : > { %v363_v26 = vpack.c.bf16 %v335_v23, %v334_v22  ;;  %v364_v27 = vpack.c.bf16 %v337_v25, %v336_v24  ;;  %v338_v28 = vld [vmem:[%s1819_s11 + $0x50] sm:$0xff]  ;;  %v339_v29 = vld [vmem:[%s1819_s11 + $0x58] sm:$0xff]  ;;  %v340_v30 = vld [vmem:[%s1819_s11 + $0x60] sm:$0xff] }
  0x83   : > { %1233 = vmatpush3.bf16.msra.mxu1 %v1370_v11  ;;  %v341_v31 = vld [vmem:[%s1819_s11 + $0x68] sm:$0xff]  ;;  %v365_v32 = vpack.c.bf16 %v339_v29, %v338_v28  ;;  %v342_v34 = vld [vmem:[%s1819_s11 + $0x70] sm:$0xff]  ;;  %v343_v35 = vld [vmem:[%s1819_s11 + $0x78] sm:$0xff]  ;;  %p1494_p4 = por %p1493_p1, %p1492_p5 }
  0x84   : > { %1187 = vmatpush3.bf16.msra.mxu0 %v1363_v2  ;;  %1234 = vmatprep.subr.bf16.mxu1 %v1371_v13  ;;  %v366_v33 = vpack.c.bf16 %v341_v31, %v340_v30  ;;  %v344_v36 = vld [vmem:[%s1827_s13] sm:$0xff]  ;;  %v345_v37 = vld [vmem:[%s1827_s13 + $0x8] sm:$0xff]  ;;  %v367_v38 = vpack.c.bf16 %v343_v35, %v342_v34  ;;  %v346_v40 = vld [vmem:[%s1827_s13 + $0x10] sm:$0xff] }
  0x85   : > { %1188 = vmatprep.subr.bf16.mxu0 %v1364_v3  ;;  %v368_v39 = vpack.c.bf16 %v345_v37, %v344_v36  ;;  %v347_v41 = vld [vmem:[%s1827_s13 + $0x18] sm:$0xff]  ;;  %v348_v42 = vld [vmem:[%s1827_s13 + $0x20] sm:$0xff]  ;;  %v349_v43 = vld [vmem:[%s1827_s13 + $0x28] sm:$0xff]  ;;  %p1495_p3 = pnand %p1494_p4, %p1488_p13 }
  0x86   : > { %v369_v44 = vpack.c.bf16 %v347_v41, %v346_v40  ;;  %v370_v45 = vpack.c.bf16 %v349_v43, %v348_v42  ;;  %v350_v46 = vld [vmem:[%s1827_s13 + $0x30] sm:$0xff]  ;;  %v351_v47 = vld [vmem:[%s1827_s13 + $0x38] sm:$0xff]  ;;  %v352_v48 = vld [vmem:[%s1827_s13 + $0x40] sm:$0xff] }
  0x87   : > { %1235 = vmatpush3.bf16.msra.mxu1 %v1371_v13  ;;  %v353_v49 = vld [vmem:[%s1827_s13 + $0x48] sm:$0xff]  ;;  %v371_v50 = vpack.c.bf16 %v351_v47, %v350_v46  ;;  %v354_v52 = vld [vmem:[%s1827_s13 + $0x50] sm:$0xff]  ;;  %v355_v53 = vld [vmem:[%s1827_s13 + $0x58] sm:$0xff] }
  0x88   : > { %1189 = vmatpush3.bf16.msra.mxu0 %v1364_v3  ;;  %1236 = vmatprep.subr.bf16.mxu1 %v1372_v16  ;;  %v372_v51 = vpack.c.bf16 %v353_v49, %v352_v48  ;;  %v356_v54 = vld [vmem:[%s1827_s13 + $0x60] sm:$0xff]  ;;  %v357_v55 = vld [vmem:[%s1827_s13 + $0x68] sm:$0xff]  ;;  %v373_v56 = vpack.c.bf16 %v355_v53, %v354_v52  ;;  %v358_v58 = vld [vmem:[%s1827_s13 + $0x70] sm:$0xff] }
  0x89   : > { %1190 = vmatprep.subr.bf16.mxu0 %v1365_v7  ;;  %v374_v57 = vpack.c.bf16 %v357_v55, %v356_v54  ;;  %v359_v59 = vld [vmem:[%s1827_s13 + $0x78] sm:$0xff]  ;;  %v1374_v61 = vld [vmem:[#allocation8 + $0x10] sm:$0xff]   ;;  %v1375_v62 = vld [vmem:[#allocation8 + $0x8] sm:$0xff]  }
  0x8a   : > { %v375_v60 = vpack.c.bf16 %v359_v59, %v358_v58  ;;  %v1376_v63 = vld [vmem:[#allocation8] sm:$0xff]  }
  0x8b   : > { %1237 = vmatpush3.bf16.msra.mxu1 %v1372_v16 }
  0x8c   : > { %1191 = vmatpush3.bf16.msra.mxu0 %v1365_v7  ;;  %1238 = vmatprep.subr.bf16.mxu1 %v1373_v21 }
  0x8d   : > { %1192 = vmatprep.subr.bf16.mxu0 %v1366_v8 }
  0x8f   : > { %1239 = vmatpush3.bf16.msra.mxu1 %v1373_v21 }
  0x90   : > { %1193 = vmatpush3.bf16.msra.mxu0 %v1366_v8  ;;  %1240 = vmatprep.subr.bf16.mxu1 %v1374_v61 }
  0x91   : > { %1194 = vmatprep.subr.bf16.mxu0 %v1367_v9 }
  0x93   : > { %1241 = vmatpush3.bf16.msra.mxu1 %v1374_v61 }
  0x94   : > { %1195 = vmatpush3.bf16.msra.mxu0 %v1367_v9  ;;  %1242 = vmatprep.subr.bf16.mxu1 %v1375_v62 }
  0x95   : > { %1196 = vmatprep.subr.bf16.mxu0 %v1368_v12 }
  0x97   : > { %1243 = vmatpush3.bf16.msra.mxu1 %v1375_v62 }
  0x98   : > { %1197 = vmatpush3.bf16.msra.mxu0 %v1368_v12  ;;  %1244 = vmatprep.subr.bf16.mxu1 %v1376_v63 }
  0x9b   : > { %1199 = vmatmul.mubr.bf16.vlgmr.msra.gmra.mxu0 %v361_v19  ;;  %1245 = vmatpush3.bf16.msra.mxu1 %v1376_v63 }
  0x9c   : > { %1202 = vmatprep.mubr.bf16.mxu0 %v362_v20 }
  0xa3   : > { %1203 = vmatmul.mubr.bf16.gmra.mxu0 %v363_v26 }
  0xa4   : > { %1206 = vmatprep.mubr.bf16.mxu0 %v364_v27 }
  0xab   : > { %1207 = vmatmul.mubr.bf16.gmra.mxu0 %v365_v32 }
  0xac   : > { %1210 = vmatprep.mubr.bf16.mxu0 %v366_v33 }
  0xb3   : > { %1211 = vmatmul.mubr.bf16.gmra.mxu0 %v367_v38 }
  0xb4   : > { %1214 = vmatprep.mubr.bf16.mxu0 %v368_v39 }
  0xbb   : > { %1215 = vmatmul.mubr.bf16.gmra.mxu0 %v369_v44 }
  0xbc   : > { %1218 = vmatprep.mubr.bf16.mxu0 %v370_v45 }
  0xc3   : > { %1219 = vmatmul.mubr.bf16.gmra.mxu0 %v371_v50 }
  0xc4   : > { %1222 = vmatprep.mubr.bf16.mxu0 %v372_v51 }
  0xcb   : > { %1223 = vmatmul.mubr.bf16.gmra.mxu0 %v373_v56 }
  0xcc   : > { %1226 = vmatprep.mubr.bf16.mxu0 %v374_v57 }
  0xd3   : > { %1227 = vmatmul.mubr.bf16.gmra.mxu0 %v375_v60 }
 0x15b   : > { %v1200_v0 = vpop.f32.mrf.mxu0 }
 0x15c   : > { %v603_v7 = vmax.f32 %v1200_v0, 0.0 }
 0x15d   : > { %v474_v1 = vpop.f32.mrf.mxu0 }
 0x15e   : > { %v601_v5 = vmax.f32 %v474_v1, 0.0 }
 0x15f   : > { %v1201_v2 = vpop.f32.mrf.mxu0 }
 0x160   : > { %v604_v3 = vmax.f32 %v1201_v2, 0.0 }
 0x161   : > { %v477_v4 = vpop.f32.mrf.mxu0 }
 0x162   : > { %v602_v6 = vmax.f32 %v477_v4, 0.0  ;;  %v634_v10 = vpack.c.bf16 %v604_v3, %v603_v7 }
 0x163   : > { %v1204_v8 = vpop.f32.mrf.mxu0 }
 0x164   : > { %v633_v9 = vpack.c.bf16 %v602_v6, %v601_v5  ;;  %v607_v17 = vmax.f32 %v1204_v8, 0.0 }
 0x165   : > { %v490_v11 = vpop.f32.mrf.mxu0 }
 0x166   : > { %1246 = vmatprep.mubr.bf16.mxu1 %v633_v9  ;;  %v605_v15 = vmax.f32 %v490_v11, 0.0 }
 0x167   : > { %v1205_v12 = vpop.f32.mrf.mxu0  ;;  %1247 = vmatmul.mubr.bf16.vlgmr.msra.gmra.mxu1 %v634_v10 }
 0x168   : > { %v608_v13 = vmax.f32 %v1205_v12, 0.0 }
 0x169   : > { %v493_v14 = vpop.f32.mrf.mxu0 }
 0x16a   : > { %v606_v16 = vmax.f32 %v493_v14, 0.0  ;;  %v636_v20 = vpack.c.bf16 %v608_v13, %v607_v17 }
 0x16b   : > { %v1208_v18 = vpop.f32.mrf.mxu0 }
 0x16c   : > { %v635_v19 = vpack.c.bf16 %v606_v16, %v605_v15  ;;  %v611_v27 = vmax.f32 %v1208_v18, 0.0 }
 0x16d   : > { %v506_v21 = vpop.f32.mrf.mxu0 }
 0x16e   : > { %1250 = vmatprep.mubr.bf16.mxu1 %v635_v19  ;;  %v609_v25 = vmax.f32 %v506_v21, 0.0 }
 0x16f   : > { %v1209_v22 = vpop.f32.mrf.mxu0  ;;  %1251 = vmatmul.mubr.bf16.gmra.mxu1 %v636_v20 }
 0x170   : > { %v612_v23 = vmax.f32 %v1209_v22, 0.0 }
 0x171   : > { %v509_v24 = vpop.f32.mrf.mxu0 }
 0x172   : > { %v610_v26 = vmax.f32 %v509_v24, 0.0  ;;  %v638_v30 = vpack.c.bf16 %v612_v23, %v611_v27 }
 0x173   : > { %v1212_v28 = vpop.f32.mrf.mxu0 }
 0x174   : > { %v637_v29 = vpack.c.bf16 %v610_v26, %v609_v25  ;;  %v615_v37 = vmax.f32 %v1212_v28, 0.0 }
 0x175   : > { %v522_v31 = vpop.f32.mrf.mxu0 }
 0x176   : > { %1254 = vmatprep.mubr.bf16.mxu1 %v637_v29  ;;  %v613_v35 = vmax.f32 %v522_v31, 0.0 }
 0x177   : > { %v1213_v32 = vpop.f32.mrf.mxu0  ;;  %1255 = vmatmul.mubr.bf16.gmra.mxu1 %v638_v30 }
 0x178   : > { %v616_v33 = vmax.f32 %v1213_v32, 0.0 }
 0x179   : > { %v525_v34 = vpop.f32.mrf.mxu0 }
 0x17a   : > { %v614_v36 = vmax.f32 %v525_v34, 0.0  ;;  %v640_v40 = vpack.c.bf16 %v616_v33, %v615_v37 }
 0x17b   : > { %v1216_v38 = vpop.f32.mrf.mxu0 }
 0x17c   : > { %v639_v39 = vpack.c.bf16 %v614_v36, %v613_v35  ;;  %v619_v47 = vmax.f32 %v1216_v38, 0.0 }
 0x17d   : > { %v538_v41 = vpop.f32.mrf.mxu0 }
 0x17e   : > { %1258 = vmatprep.mubr.bf16.mxu1 %v639_v39  ;;  %v617_v45 = vmax.f32 %v538_v41, 0.0 }
 0x17f   : > { %v1217_v42 = vpop.f32.mrf.mxu0  ;;  %1259 = vmatmul.mubr.bf16.gmra.mxu1 %v640_v40 }
 0x180   : > { %v620_v43 = vmax.f32 %v1217_v42, 0.0 }
 0x181   : > { %v541_v44 = vpop.f32.mrf.mxu0 }
 0x182   : > { %v618_v46 = vmax.f32 %v541_v44, 0.0  ;;  %v642_v50 = vpack.c.bf16 %v620_v43, %v619_v47 }
 0x183   : > { %v1220_v48 = vpop.f32.mrf.mxu0 }
 0x184   : > { %v641_v49 = vpack.c.bf16 %v618_v46, %v617_v45  ;;  %v623_v57 = vmax.f32 %v1220_v48, 0.0 }
 0x185   : > { %v554_v51 = vpop.f32.mrf.mxu0 }
 0x186   : > { %1262 = vmatprep.mubr.bf16.mxu1 %v641_v49  ;;  %v621_v55 = vmax.f32 %v554_v51, 0.0 }
 0x187   : > { %v1221_v52 = vpop.f32.mrf.mxu0  ;;  %1263 = vmatmul.mubr.bf16.gmra.mxu1 %v642_v50 }
 0x188   : > { %v624_v53 = vmax.f32 %v1221_v52, 0.0 }
 0x189   : > { %v557_v54 = vpop.f32.mrf.mxu0 }
 0x18a   : > { %v622_v56 = vmax.f32 %v557_v54, 0.0  ;;  %v644_v60 = vpack.c.bf16 %v624_v53, %v623_v57 }
 0x18b   : > { %v1224_v58 = vpop.f32.mrf.mxu0 }
 0x18c   : > { %v643_v59 = vpack.c.bf16 %v622_v56, %v621_v55  ;;  %v627_v3 = vmax.f32 %v1224_v58, 0.0 }
 0x18d   : > { %v570_v61 = vpop.f32.mrf.mxu0 }
 0x18e   : > { %1266 = vmatprep.mubr.bf16.mxu1 %v643_v59  ;;  %v625_v1 = vmax.f32 %v570_v61, 0.0 }
 0x18f   : > { %v1225_v62 = vpop.f32.mrf.mxu0  ;;  %1267 = vmatmul.mubr.bf16.gmra.mxu1 %v644_v60 }
 0x190   : > { %v628_v63 = vmax.f32 %v1225_v62, 0.0 }
 0x191   : > { %v573_v0 = vpop.f32.mrf.mxu0 }
 0x192   : > { %v626_v2 = vmax.f32 %v573_v0, 0.0  ;;  %v646_v6 = vpack.c.bf16 %v628_v63, %v627_v3 }
 0x193   : > { %v1228_v4 = vpop.f32.mrf.mxu0 }
 0x194   : > { %v645_v5 = vpack.c.bf16 %v626_v2, %v625_v1  ;;  %v631_v13 = vmax.f32 %v1228_v4, 0.0 }
 0x195   : > { %v586_v7 = vpop.f32.mrf.mxu0 }
 0x196   : > { %1270 = vmatprep.mubr.bf16.mxu1 %v645_v5  ;;  %v629_v11 = vmax.f32 %v586_v7, 0.0 }
 0x197   : > { %v1229_v8 = vpop.f32.mrf.mxu0  ;;  %1271 = vmatmul.mubr.bf16.gmra.mxu1 %v646_v6 }
 0x198   : > { %v632_v9 = vmax.f32 %v1229_v8, 0.0 }
 0x199   : > { %v589_v10 = vpop.f32.mrf.mxu0 }
 0x19a   : > { %v630_v12 = vmax.f32 %v589_v10, 0.0  ;;  %v648_v15 = vpack.c.bf16 %v632_v9, %v631_v13 }
 0x19c   : > { %v647_v14 = vpack.c.bf16 %v630_v12, %v629_v11 }
 0x19e   : > { %1274 = vmatprep.mubr.bf16.mxu1 %v647_v14 }
 0x19f   : > { %1275 = vmatmul.mubr.bf16.gmra.mxu1 %v648_v15 }
 0x227   : > { %v1248_v16 = vpop.f32.mrf.mxu1 }
 0x228   : > { %876 = vst [vmem:[%s1874_s24 + $0x10] sm:$0xff] %v1248_v16 }
 0x229   : > { %v747_v17 = vpop.f32.mrf.mxu1 }
 0x22a   : > { %874 = vst [vmem:[%s1874_s24] sm:$0xff] %v747_v17 }
 0x22b   : > { %v1249_v18 = vpop.f32.mrf.mxu1 }
 0x22c   : > { %877 = vst [vmem:[%s1874_s24 + $0x18] sm:$0xff] %v1249_v18 }
 0x22d   : > { %v750_v19 = vpop.f32.mrf.mxu1 }
 0x22e   : > { %875 = vst [vmem:[%s1874_s24 + $0x8] sm:$0xff] %v750_v19 }
 0x22f   : > { %v1252_v20 = vpop.f32.mrf.mxu1 }
 0x230   : > { %880 = vst [vmem:[%s1874_s24 + $0x30] sm:$0xff] %v1252_v20 }
 0x231   : > { %v763_v21 = vpop.f32.mrf.mxu1 }
 0x232   : > { %878 = vst [vmem:[%s1874_s24 + $0x20] sm:$0xff] %v763_v21 }
 0x233   : > { %v1253_v22 = vpop.f32.mrf.mxu1 }
 0x234   : > { %881 = vst [vmem:[%s1874_s24 + $0x38] sm:$0xff] %v1253_v22 }
 0x235   : > { %v766_v23 = vpop.f32.mrf.mxu1 }
 0x236   : > { %879 = vst [vmem:[%s1874_s24 + $0x28] sm:$0xff] %v766_v23 }
 0x237   : > { %v1256_v24 = vpop.f32.mrf.mxu1 }
 0x238   : > { %884 = vst [vmem:[%s1874_s24 + $0x50] sm:$0xff] %v1256_v24 }
 0x239   : > { %v779_v25 = vpop.f32.mrf.mxu1 }
 0x23a   : > { %882 = vst [vmem:[%s1874_s24 + $0x40] sm:$0xff] %v779_v25 }
 0x23b   : > { %v1257_v26 = vpop.f32.mrf.mxu1 }
 0x23c   : > { %885 = vst [vmem:[%s1874_s24 + $0x58] sm:$0xff] %v1257_v26 }
 0x23d   : > { %v782_v27 = vpop.f32.mrf.mxu1 }
 0x23e   : > { %883 = vst [vmem:[%s1874_s24 + $0x48] sm:$0xff] %v782_v27 }
 0x23f   : > { %v1260_v28 = vpop.f32.mrf.mxu1 }
 0x240   : > { %888 = vst [vmem:[%s1874_s24 + $0x70] sm:$0xff] %v1260_v28 }
 0x241   : > { %v795_v29 = vpop.f32.mrf.mxu1 }
 0x242   : > { %886 = vst [vmem:[%s1874_s24 + $0x60] sm:$0xff] %v795_v29 }
 0x243   : > { %v1261_v30 = vpop.f32.mrf.mxu1 }
 0x244   : > { %889 = vst [vmem:[%s1874_s24 + $0x78] sm:$0xff] %v1261_v30 }
 0x245   : > { %v798_v31 = vpop.f32.mrf.mxu1 }
 0x246   : > { %887 = vst [vmem:[%s1874_s24 + $0x68] sm:$0xff] %v798_v31 }
 0x247   : > { %v1264_v32 = vpop.f32.mrf.mxu1 }
 0x248   : > { %1498 = shalt.err (!%p1495_p3)
}
 0x249   : > { %s1499_s10 = scalar_lea.hbm %s1897_s12, 2048  ;;  %s1503_s26 = scalar_lea.hbm %s2004_s4, 4096 }
 0x24a   : > { %p1500_p2 = scmp.ne.s32.totalorder %s1897_s12, %s1499_s10  ;;  %p1504_p11 = scmp.lt.s32.totalorder %s1897_s12, %s2004_s4 }
 0x24b   : > { %p1505_p10 = scmp.lt.s32.totalorder %s1503_s26, %s1499_s10 }
 0x24c   : > { %p1501_p0 = pnand %p1500_p2, %p2025_p7 }
 0x24d   : > { %p1506_p6 = por %p1505_p10, %p1504_p11 }
 0x24e   : > { %p1502_p8 = pneg %p1501_p0 }
 0x250   : > { %p1507_p12 = pnand %p1506_p6, %p1502_p8 }
 0x252   : > { %1510 = shalt.err (!%p1507_p12)
}
 0x253   : > { %s1602_s14 = smov 128   ;;  %s1603_s30 = smov 8   ;;  %v811_v33 = vpop.f32.mrf.mxu1 }
 0x254   : > { %1290 = dma.vmem_to_hbm [thread:$0]  (%p2025_p7), %s1899_s28, 2048, %s1897_s12, %s907_s6, %s1602_s14, %s1602_s14, %s1603_s30  }
 0x255   : > { %s1930_s29 = scalar_lea.vmem [#allocation11], %s1815_s8  ;;  %v1265_v34 = vpop.f32.mrf.mxu1  ;;  %s1953_s6 = scalar_lea.hbm %s2005_s5, %s1132_s17 }
 0x256   : > { %892 = vst [vmem:[%s1930_s29 + $0x10] sm:$0xff] %v1264_v32  ;;  %890 = vst [vmem:[%s1930_s29] sm:$0xff] %v811_v33  ;;  %s941_s8 = sshll.u32 %s1930_s29, 4  ;;  %s912_s7 = scalar_lea.sflag [#allocation12], %s1812_s2  ;;  %s1955_s8 = int_to_ptr.vmem [resolvable:$true] %s941_s8 }
 0x257   : > { %893 = vst [vmem:[%s1930_s29 + $0x18] sm:$0xff] %v1265_v34  ;;  %v814_v35 = vpop.f32.mrf.mxu1  ;;  %s1511_s9 = scalar_lea.vmem %s1955_s8, 2048  ;;  %s1604_s16 = smov [#allocation11]  }
 0x258   : > { %891 = vst [vmem:[%s1930_s29 + $0x8] sm:$0xff] %v814_v35  ;;  %p1512_p9 = scmp.ne.s32.totalorder %s1955_s8, %s1511_s9  ;;  %s1515_s22 = sshll.u32 %s1604_s16, 4  ;;  %s1516_s22 = int_to_ptr.vmem [resolvable:$false] %s1515_s22 }
 0x259   : > { %v1268_v36 = vpop.f32.mrf.mxu1  ;;  %s1517_s10 = scalar_lea.vmem %s1516_s22, 4096  ;;  %p1518_p1 = scmp.lt.s32.totalorder %s1955_s8, %s1516_s22 }
 0x25a   : > { %896 = vst [vmem:[%s1930_s29 + $0x30] sm:$0xff] %v1268_v36  ;;  %p1513_p13 = pnand %p1512_p9, %p2025_p7  ;;  %p1519_p4 = scmp.lt.s32.totalorder %s1517_s10, %s1511_s9 }
 0x25b   : > { %v827_v37 = vpop.f32.mrf.mxu1 }
 0x25c   : > { %894 = vst [vmem:[%s1930_s29 + $0x20] sm:$0xff] %v827_v37  ;;  %p1514_p5 = pneg %p1513_p13  ;;  %p1520_p3 = por %p1519_p4, %p1518_p1 }
 0x25d   : > { %v1269_v38 = vpop.f32.mrf.mxu1 }
 0x25e   : > { %897 = vst [vmem:[%s1930_s29 + $0x38] sm:$0xff] %v1269_v38  ;;  %p1521_p2 = pnand %p1520_p3, %p1514_p5 }
 0x25f   : > { %v830_v39 = vpop.f32.mrf.mxu1 }
 0x260   : > { %895 = vst [vmem:[%s1930_s29 + $0x28] sm:$0xff] %v830_v39 }
 0x261   : > { %v1272_v40 = vpop.f32.mrf.mxu1 }
 0x262   : > { %900 = vst [vmem:[%s1930_s29 + $0x50] sm:$0xff] %v1272_v40 }
 0x263   : > { %v843_v41 = vpop.f32.mrf.mxu1 }
 0x264   : > { %898 = vst [vmem:[%s1930_s29 + $0x40] sm:$0xff] %v843_v41 }
 0x265   : > { %v1273_v42 = vpop.f32.mrf.mxu1 }
 0x266   : > { %901 = vst [vmem:[%s1930_s29 + $0x58] sm:$0xff] %v1273_v42 }
 0x267   : > { %v846_v43 = vpop.f32.mrf.mxu1 }
 0x268   : > { %899 = vst [vmem:[%s1930_s29 + $0x48] sm:$0xff] %v846_v43 }
 0x269   : > { %v1276_v44 = vpop.f32.mrf.mxu1 }
 0x26a   : > { %904 = vst [vmem:[%s1930_s29 + $0x70] sm:$0xff] %v1276_v44 }
 0x26b   : > { %v859_v45 = vpop.f32.mrf.mxu1 }
 0x26c   : > { %902 = vst [vmem:[%s1930_s29 + $0x60] sm:$0xff] %v859_v45 }
 0x26d   : > { %v1277_v46 = vpop.f32.mrf.mxu1 }
 0x26e   : > { %905 = vst [vmem:[%s1930_s29 + $0x78] sm:$0xff] %v1277_v46 }
 0x26f   : > { %v862_v47 = vpop.f32.mrf.mxu1 }
 0x270   : > { %903 = vst [vmem:[%s1930_s29 + $0x68] sm:$0xff] %v862_v47 }
 0x271   : > { %1524 = shalt.err (!%p1521_p2)
}
 0x272   : > { %s1525_s17 = scalar_lea.hbm %s1953_s6, 2048  ;;  %s1529_s0 = scalar_lea.hbm %s2005_s5, 4096 }
 0x273   : > { %p1526_p0 = scmp.ne.s32.totalorder %s1953_s6, %s1525_s17  ;;  %p1530_p10 = scmp.lt.s32.totalorder %s1953_s6, %s2005_s5 }
 0x274   : > { %p1531_p6 = scmp.lt.s32.totalorder %s1529_s0, %s1525_s17 }
 0x275   : > { %p1527_p8 = pnand %p1526_p0, %p2025_p7 }
 0x276   : > { %p1532_p12 = por %p1531_p6, %p1530_p10 }
 0x277   : > { %p1528_p11 = pneg %p1527_p8 }
 0x279   : > { %p1533_p9 = pnand %p1532_p12, %p1528_p11 }
 0x27b   : > { %1536 = shalt.err (!%p1533_p9)
}
 0x27c   : > { %1291 = dma.vmem_to_hbm [thread:$0]  (%p2025_p7), %s1955_s8, 2048, %s1953_s6, %s912_s7, %s1602_s14, %s1602_s14, %s1603_s30  }
 0x27d PF: > { %s956_s24 = sand.u32 1, %s1579_s18   ;;  %p2026_p13 = scmp.ne.s32.totalorder %s2012_s25, 0 }
 0x27e   : > { %p2027_p5 = scmp.ge.s32.totalorder %s1591_s21, 2  ;;  %s957_s29 = scalar_lea.sflag [#allocation4], %s956_s24 }
 0x280   : > { %p1309_p1 = pnand %p2027_p5, %p2026_p13 }
 0x282   : > { %p1310_p4 = pneg %p1309_p1 }
 0x284   : > { %1570 = dma.done.wait (%p1310_p4), %s957_s29, 2048  }
 0x285   : > { %1572 = vsyncadd (%p1310_p4), %s957_s29, 4294965248  ;;  %s966_s28 = scalar_lea.sflag [#allocation12], %s956_s24 }
 0x286   : > { %1574 = dma.done.wait (%p1310_p4), %s966_s28, 2048  }
 0x287   : > { %1576 = vsyncadd (%p1310_p4), %s966_s28, 4294965248  ;;  %p26_p7 = scmp.ge.s32.totalorder %s1707_s15, 4   ;;  %s2028_s18 = smov %s1583_s19 }
 0x288   : > { %s2029_s19 = smov %s1587_s20  ;;  %s2030_s20 = smov %s1723_s27 }
 0x289   : > { %s2031_s21 = smov %s1707_s15  ;;  %28 = sbr.rel (!%p26_p7) target bundleno = 13 (0xd), region = 119 }
 0x28e   :  { %971 = vsyncpa [#allocation3], 1 }
 0x28f   :  { %973 = vsyncpa [#allocation3 + $0x1], 1 }
 0x290   :  { %974 = vsyncpa [#allocation6], 1 }
 0x291   :  { %976 = vsyncpa [#allocation6 + $0x1], 1 }
 0x292   :  { %977 = vsyncpa [#allocation9], 1 }
 0x293   :  { %978 = vsyncpa [#allocation4], 1 }
 0x294   :  { %980 = vsyncpa [#allocation4 + $0x1], 1 }
 0x295   :  { %981 = vsyncpa [#allocation12], 1 }
 0x296   :  { %983 = vsyncpa [#allocation12 + $0x1], 1 }

</bundles_post_ra>
